<compile_context>
chip_gen: v5e
topology: v5e:2x2
jax: 0.10.0
libtpu: 0.0.40
codegen_flags: <defaults>
</compile_context>

<pallas_src>
import functools

import jax
import jax.numpy as jnp
from jax.experimental import pallas as pl
from jax.experimental.pallas import tpu as pltpu

LANES = 128
SUBLANES = 8
MAX_TILE_ROWS = 2048   # up to 1 MiB f32 per input per grid step
NCORES = 2             # 2-way parallel grid axis (both TCs on v7x; harmless on 1-TC chips)


def _round_up(x, m):
    return ((x + m - 1) // m) * m


def _vfl_kernel(pred_ref, true_ref, out_ref, *, gamma, alpha, total, tile_rows,
                steps_per_core, apply_mask):
    c = pl.program_id(0)   # parallel (core) axis
    i = pl.program_id(1)   # arbitrary (reduction) axis

    @pl.when(i == 0)
    def _init():
        out_ref[...] = jnp.zeros_like(out_ref)

    x = pred_ref[...].astype(jnp.float32)   # logits
    z = true_ref[...].astype(jnp.float32)   # targets

    # Numerically stable BCE-with-logits:  max(x,0) - x*z + log1p(exp(-|x|))
    e = jnp.exp(-jnp.abs(x))                                   # EUP: exp
    bce = jnp.maximum(x, 0.0) - x * z + jnp.log1p(e)           # EUP: log

    # sigmoid(x) reusing e:  sigmoid = where(x>=0, 1, e) / (1 + e)
    d = 1.0 + e
    r = pl.reciprocal(d, approx=True)                          # EUP: cheap approx recip
    r = r * (2.0 - d * r)                                      # Newton step (VPU) -> ~f32 accurate
    pred_prob = jnp.where(x >= 0.0, 1.0, e) * r

    # focal weight: true where true>0, else alpha * |p - true|^gamma  (single select)
    t = jnp.abs(pred_prob - z)
    if gamma == 1.5:
        t_pow = t * jnp.sqrt(t)                                # EUP: sqrt (avoids exp/log pow)
    elif gamma == 2.0:
        t_pow = t * t
    elif gamma == 1.0:
        t_pow = t
    else:
        t_pow = t ** gamma
    focal_weight = jnp.where(z > 0.0, z, alpha * t_pow)

    contrib = bce * focal_weight

    if apply_mask:
        # Padding lives only at the tail of the flat array; mask it out.
        base_row = (c * steps_per_core + i) * tile_rows
        row_ids = jax.lax.broadcasted_iota(jnp.int32, (tile_rows, LANES), 0)
        lane_ids = jax.lax.broadcasted_iota(jnp.int32, (tile_rows, LANES), 1)
        elem_idx = (base_row + row_ids) * LANES + lane_ids
        contrib = jnp.where(elem_idx < total, contrib, 0.0)

    # Per-(sublane, lane) partial sums: plain VPU add tree, no per-step XLU reduce
    # and no scalar loop-carried dependency.
    partial = contrib.reshape(tile_rows // SUBLANES, SUBLANES, LANES).sum(axis=0)
    out_ref[...] += partial.reshape(1, SUBLANES, LANES)


def vf_loss(pred, true, gamma=1.5, alpha=0.25, reduction="mean"):
    """VFLoss wrapping BCEWithLogitsLoss (default reduction='mean'). Returns a scalar."""
    assert pred.shape == true.shape
    total = pred.size

    flat_pred = pred.reshape(-1)
    flat_true = true.reshape(-1)

    # Lane-dense rows of 128 elements, split across NCORES, tiles of tile_rows rows
    # (multiple of 8, capped so double-buffered VMEM stays comfortable).
    rows = pl.cdiv(total, LANES)
    rows_per_core = pl.cdiv(rows, NCORES)
    tile_rows = min(MAX_TILE_ROWS, _round_up(rows_per_core, SUBLANES))
    steps = pl.cdiv(rows_per_core, tile_rows)
    padded_rows = NCORES * steps * tile_rows
    padded = padded_rows * LANES
    pad = padded - total

    if pad:
        flat_pred = jnp.pad(flat_pred, (0, pad))
        flat_true = jnp.pad(flat_true, (0, pad))

    pred2d = flat_pred.reshape(padded_rows, LANES)
    true2d = flat_true.reshape(padded_rows, LANES)

    kernel = functools.partial(
        _vfl_kernel,
        gamma=float(gamma),
        alpha=float(alpha),
        total=int(total),
        tile_rows=int(tile_rows),
        steps_per_core=int(steps),
        apply_mask=bool(pad),
    )

    in_spec = pl.BlockSpec((tile_rows, LANES), lambda c, i: (c * steps + i, 0))
    out_spec = pl.BlockSpec((1, SUBLANES, LANES), lambda c, i: (c, 0, 0))

    partials = pl.pallas_call(
        kernel,
        out_shape=jax.ShapeDtypeStruct((NCORES, SUBLANES, LANES), jnp.float32),
        grid_spec=pltpu.PrefetchScalarGridSpec(
            num_scalar_prefetch=0,
            grid=(NCORES, steps),
            in_specs=[in_spec, in_spec],
            out_specs=out_spec,
        ),
        compiler_params=pltpu.CompilerParams(
            dimension_semantics=("parallel", "arbitrary"),
            vmem_limit_bytes=32 * 1024 * 1024,
        ),
    )(pred2d, true2d)

    # Tiny final cross-lane reduction (+ mean) done in the wrapper.
    s = jnp.sum(partials)
    if reduction == "mean":
        return s / jnp.float32(total)
    elif reduction == "sum":
        return s
    # TODO(synk): reduction='none' (elementwise output) not implemented in this kernel.
    raise NotImplementedError("reduction='none' is not supported")


def vf_loss_ref(pred, true, gamma=1.5, alpha=0.25):
    """Pure-JAX reference mirroring the PyTorch module."""
    x = pred.astype(jnp.float32)
    z = true.astype(jnp.float32)
    bce = jnp.maximum(x, 0.0) - x * z + jnp.log1p(jnp.exp(-jnp.abs(x)))
    p = jax.nn.sigmoid(x)
    fw = z * (z > 0.0).astype(jnp.float32) + alpha * jnp.abs(p - z) ** gamma * (
        z <= 0.0
    ).astype(jnp.float32)
    return jnp.mean(bce * fw)


if __name__ == "__main__":
    key = jax.random.PRNGKey(0)
    k1, k2 = jax.random.split(key)

    # NCHW inputs, consistent with a detection-head objectness/cls map.
    N, C, H, W = 2, 4, 16, 16
    pred = jax.random.normal(k1, (N, C, H, W), dtype=jnp.float32) * 2.0
    # targets in [0, 1], with some exact zeros (negative anchors)
    raw = jax.random.uniform(k2, (N, C, H, W), dtype=jnp.float32)
    true = jnp.where(raw > 0.5, raw, 0.0)

    out = vf_loss(pred, true, gamma=1.5, alpha=0.25)
    out = jax.block_until_ready(out)

    ref = vf_loss_ref(pred, true, gamma=1.5, alpha=0.25)
    assert jnp.allclose(out, ref, rtol=1e-5, atol=1e-6), (out, ref)
    print("KERNEL_OK")
</pallas_src>

<mosaic_0001>
module attributes {stable_mosaic.version = 11 : i64} {
  func.func @_vfl_kernel(%arg0: i32, %arg1: i32, %arg2: memref<8x128xf32, #tpu.memory_space<vmem>>, %arg3: memref<8x128xf32, #tpu.memory_space<vmem>>, %arg4: memref<1x8x128xf32, #tpu.memory_space<vmem>>) attributes {dimension_semantics = [#tpu.dimension_semantics<parallel>, #tpu.dimension_semantics<arbitrary>], iteration_bounds = array<i64: 2, 1>, scalar_prefetch = 0 : i64, scratch_operands = 0 : i64, tpu.core_type = #tpu.core_type<tc>, window_params = [{transform_indices = @transform_0, window_bounds = array<i64: 8, 128>}, {transform_indices = @transform_1, window_bounds = array<i64: 8, 128>}, {transform_indices = @transform_2, window_bounds = array<i64: 1, 8, 128>}]} {
    %c0_i32 = arith.constant 0 : i32
    %0 = arith.cmpi eq, %arg1, %c0_i32 : i32
    %1 = arith.extui %0 : i1 to i32
    %c0_i32_0 = arith.constant 0 : i32
    %2 = arith.cmpi ne, %1, %c0_i32_0 : i32
    scf.if %2 {
      %cst_18 = arith.constant 0.000000e+00 : f32
      %43 = vector.broadcast %cst_18 : f32 to vector<1x8x128xf32>
      %c0_19 = arith.constant 0 : index
      %c0_20 = arith.constant 0 : index
      %c0_21 = arith.constant 0 : index
      %44 = vector.load %arg4[%c0_19, %c0_20, %c0_21] : memref<1x8x128xf32, #tpu.memory_space<vmem>>, vector<1x8x128xf32>
      tpu.vector_store %arg4[%c0_19, %c0_20, %c0_21], %43 {strides = array<i32>} : memref<1x8x128xf32, #tpu.memory_space<vmem>>, vector<1x8x128xf32>,
    } else {
    }
    %c0 = arith.constant 0 : index
    %c0_1 = arith.constant 0 : index
    %3 = vector.load %arg2[%c0, %c0_1] : memref<8x128xf32, #tpu.memory_space<vmem>>, vector<8x128xf32>
    %c0_2 = arith.constant 0 : index
    %c0_3 = arith.constant 0 : index
    %4 = vector.load %arg3[%c0_2, %c0_3] : memref<8x128xf32, #tpu.memory_space<vmem>>, vector<8x128xf32>
    %5 = math.absf %3 : vector<8x128xf32>
    %cst = arith.constant 0.000000e+00 : f32
    %6 = vector.broadcast %cst : f32 to vector<8x128xf32>
    %7 = arith.subf %6, %5 : vector<8x128xf32>
    %8 = math.exp %7 : vector<8x128xf32>
    %cst_4 = arith.constant 0.000000e+00 : f32
    %9 = vector.broadcast %cst_4 : f32 to vector<8x128xf32>
    %10 = arith.maximumf %3, %9 : vector<8x128xf32>
    %11 = arith.mulf %3, %4 : vector<8x128xf32>
    %12 = arith.subf %10, %11 : vector<8x128xf32>
    %13 = math.log1p %8 : vector<8x128xf32>
    %14 = arith.addf %12, %13 : vector<8x128xf32>
    %cst_5 = arith.constant 1.000000e+00 : f32
    %15 = vector.broadcast %cst_5 : f32 to vector<8x128xf32>
    %16 = arith.addf %15, %8 : vector<8x128xf32>
    %17 = tpu.reciprocal %16 {approx = true} : vector<8x128xf32> -> vector<8x128xf32>
    %18 = arith.mulf %16, %17 : vector<8x128xf32>
    %cst_6 = arith.constant 2.000000e+00 : f32
    %19 = vector.broadcast %cst_6 : f32 to vector<8x128xf32>
    %20 = arith.subf %19, %18 : vector<8x128xf32>
    %21 = arith.mulf %17, %20 : vector<8x128xf32>
    %cst_7 = arith.constant 0.000000e+00 : f32
    %22 = vector.broadcast %cst_7 : f32 to vector<8x128xf32>
    %23 = arith.cmpf oge, %3, %22 : vector<8x128xf32>
    %cst_8 = arith.constant 1.000000e+00 : f32
    %24 = vector.broadcast %cst_8 : f32 to vector<8x128xf32>
    %25 = arith.select %23, %24, %8 : vector<8x128xi1>, vector<8x128xf32>
    %26 = arith.mulf %25, %21 : vector<8x128xf32>
    %27 = arith.subf %26, %4 : vector<8x128xf32>
    %28 = math.absf %27 : vector<8x128xf32>
    %29 = math.sqrt %28 : vector<8x128xf32>
    %30 = arith.mulf %28, %29 : vector<8x128xf32>
    %cst_9 = arith.constant 0.000000e+00 : f32
    %31 = vector.broadcast %cst_9 : f32 to vector<8x128xf32>
    %32 = arith.cmpf ogt, %4, %31 : vector<8x128xf32>
    %cst_10 = arith.constant 2.500000e-01 : f32
    %33 = vector.broadcast %cst_10 : f32 to vector<8x128xf32>
    %34 = arith.mulf %33, %30 : vector<8x128xf32>
    %35 = arith.select %32, %4, %34 : vector<8x128xi1>, vector<8x128xf32>
    %36 = arith.mulf %14, %35 : vector<8x128xf32>
    %37 = vector.shape_cast %36 : vector<8x128xf32> to vector<1x8x128xf32>
    %cst_11 = arith.constant dense<0.000000e+00> : vector<8x128xf32>
    %38 = vector.multi_reduction <add>, %37, %cst_11 [0] : vector<1x8x128xf32> to vector<8x128xf32>
    %c0_12 = arith.constant 0 : index
    %c0_13 = arith.constant 0 : index
    %c0_14 = arith.constant 0 : index
    %39 = vector.load %arg4[%c0_12, %c0_13, %c0_14] : memref<1x8x128xf32, #tpu.memory_space<vmem>>, vector<1x8x128xf32>
    %40 = vector.shape_cast %38 : vector<8x128xf32> to vector<1x8x128xf32>
    %41 = arith.addf %39, %40 : vector<1x8x128xf32>
    %c0_15 = arith.constant 0 : index
    %c0_16 = arith.constant 0 : index
    %c0_17 = arith.constant 0 : index
    %42 = vector.load %arg4[%c0_15, %c0_16, %c0_17] : memref<1x8x128xf32, #tpu.memory_space<vmem>>, vector<1x8x128xf32>
    tpu.vector_store %arg4[%c0_15, %c0_16, %c0_17], %41 {strides = array<i32>} : memref<1x8x128xf32, #tpu.memory_space<vmem>>, vector<1x8x128xf32>,
    return
  }
  func.func @transform_0(%arg0: i32, %arg1: i32) -> (i32, i32) {
    %c1_i32 = arith.constant 1 : i32
    %0 = arith.muli %arg0, %c1_i32 : i32
    %1 = arith.addi %0, %arg1 : i32
    %c0_i32 = arith.constant 0 : i32
    %c0_i32_0 = arith.constant 0 : i32
    return %1, %c0_i32 : i32, i32
  }
  func.func @transform_1(%arg0: i32, %arg1: i32) -> (i32, i32) {
    %c1_i32 = arith.constant 1 : i32
    %0 = arith.muli %arg0, %c1_i32 : i32
    %1 = arith.addi %0, %arg1 : i32
    %c0_i32 = arith.constant 0 : i32
    %c0_i32_0 = arith.constant 0 : i32
    return %1, %c0_i32 : i32, i32
  }
  func.func @transform_2(%arg0: i32, %arg1: i32) -> (i32, i32, i32) {
    %c0_i32 = arith.constant 0 : i32
    %c0_i32_0 = arith.constant 0 : i32
    %c0_i32_1 = arith.constant 0 : i32
    return %arg0, %c0_i32, %c0_i32_0 : i32, i32, i32
  }
}

</mosaic_0001>

<bundles_post_ra>
// kernel: tpu_custom_call.1
= control target key start
LH: loop header
LB: loop body
LE: loop exit
PB: predicated region body
PF: predicated region fallthrough
CT: control target
= control target key end

     0   :  { %7 = vsyncpa [#allocation3], 0  ;;  %s782_s0 = inlined_call_operand.hbm [shape: f32[16,128], index: 0, kind: input, shape index: {}]   ;;  %s783_s1 = inlined_call_operand.hbm [shape: f32[16,128], index: 1, kind: input, shape index: {}]   ;;  %s784_s2 = inlined_call_operand.hbm [shape: f32[2,8,128], index: 2, kind: output, shape index: {}]  }
   0x1   :  { %9 = vsyncpa [#allocation3 + $0x1], 0 }
   0x2   :  { %10 = vsyncpa [#allocation6], 0 }
   0x3   :  { %12 = vsyncpa [#allocation6 + $0x1], 0 }
   0x4   :  { %13 = vsyncpa [#allocation4], 0 }
   0x5   :  { %15 = vsyncpa [#allocation4 + $0x1], 0  ;;  %s649_s9 = smov 0   ;;  %s651_s10 = smov 0  }
   0x6   :  { %s653_s11 = smov 0   ;;  %s655_s12 = smov 0  }
   0x7   :  { %s657_s13 = smov 0   ;;  %s659_s14 = smov 0  }
   0x8 LB: > { %s394_s15 = sadd.s32 4294967295, %s632_s14   ;;  %s395_s16 = sadd.s32 4294967294, %s632_s14   ;;  %s632_s14 = sphi %s659_s14, %s21_s14   ;;  %s628_s13 = sphi %s657_s13, %s793_s13   ;;  %s624_s12 = sphi %s655_s12, %s792_s12   ;;  %s620_s11 = sphi %s653_s11, %s791_s11   ;;  %s616_s10 = sphi %s651_s10, %s790_s10   ;;  %s612_s9 = sphi %s649_s9, %s789_s9  }
   0x9   : > { %s33_s17 = sadd.s32 1, %s628_s13  ;;  %s42_s18 = sadd.s32 1, %s620_s11 }
   0xa   : > { %p35_p0 = scmp.ge.s32.totalorder %s33_s17, 2  ;;  %p49_p1 = scmp.ne.s32.totalorder %s620_s11, %s616_s10 }
   0xb   : > { %p50_p2 = scmp.eq.s32.totalorder %s632_s14, 0  ;;  %p55_p3 = scmp.ne.s32.totalorder %s616_s10, %s612_s9 }
   0xc   : > { %s795_s17 = smov (%p35_p0, %s33_s17), 0  ;;  %p56_p5 = scmp.eq.s32.totalorder %s394_s15, 0 }
   0xd   : > { %p690_p4 = por %p50_p2, %p49_p1  ;;  %s39_s20 = ssub.s32 %s628_s13, %s795_s17 }
   0xe   : > { %p107_p6 = scmp.eq.s32.totalorder %s394_s15, 1  ;;  %p40_p7 = scmp.eq.s32.totalorder %s39_s20, 0 }
   0xf   : > { %p696_p8 = por %p56_p5, %p55_p3  ;;  %p113_p10 = scmp.eq.s32.totalorder %s395_s16, 1 }
  0x10   : > { %p700_p9 = por %p107_p6, %p49_p1  ;;  %p397_p12 = scmp.ge.s32.totalorder %s632_s14, 2 }
  0x11   : > { %s705_s23 = scalar_select %p40_p7, %s620_s11, %s42_s18  }
  0x12   : > { %p707_p11 = por %p113_p10, %p55_p3  ;;  %p427_p13 = scmp.lt.s32.totalorder %s632_s14, 2 }
  0x13   : > { %s133_s25 = sand.u32 1, %s620_s11   ;;  %s399_s27 = sshll.u32 %s628_s13, 3 }
  0x14   : > { %s398_s26 = sshll.u32 %s133_s25, 3  ;;  %s142_s30 = scalar_lea.hbm %s782_s0, %s399_s27 }
  0x15   : > { %s137_s3 = scalar_lea.vmem [#allocation2], %s398_s26  ;;  %s144_s5 = sshll.u32 %s142_s30, 4  ;;  %s145_s5 = int_to_ptr.hbm [resolvable:$true] %s144_s5 }
  0x16   : > { %s146_s4 = sshll.u32 %s137_s3, 4  ;;  %p417_p0 = pnand %p427_p13, %p690_p4  ;;  %s147_s4 = int_to_ptr.vmem [resolvable:$true] %s146_s4 }
  0x17   : > { %p402_p1 = scmp.ge.s32.totalorder %s632_s14, 1  ;;  %p171_p2 = scmp.lt.s32.totalorder %s632_s14, 3 }
  0x18   : > { %s134_s6 = scalar_lea.sflag [#allocation3], %s133_s25  ;;  %s162_s15 = scalar_lea.hbm %s783_s1, %s399_s27 }
  0x19   : > { %419 = dma.hbm_to_vmem [thread:$0]  (!%p417_p0), %s145_s5, 128, %s147_s4, %s134_s6  }
  0x1a   : > { %p172_p3 = pnand %p402_p1, %p171_p2  ;;  %s157_s16 = scalar_lea.vmem [#allocation5], %s398_s26 }
  0x1b   : > { %s166_s18 = sshll.u32 %s157_s16, 4  ;;  %s164_s20 = sshll.u32 %s162_s15, 4  ;;  %s167_s18 = int_to_ptr.vmem [resolvable:$true] %s166_s18  ;;  %s165_s20 = int_to_ptr.hbm [resolvable:$true] %s164_s20 }
  0x1c   : > { %s154_s28 = scalar_lea.sflag [#allocation6], %s133_s25  ;;  %175 = sbr.rel (%p172_p3) target bundleno = 102 (0x66), region = 28 }
  0x1d   : > { %422 = dma.hbm_to_vmem [thread:$0]  (!%p417_p0), %s165_s20, 128, %s167_s18, %s154_s28  }
  0x1e   : > { %s726_s19 = sand.u32 (!%p172_p3), 1, %s616_s10  }
  0x1f   : > { %s729_s29 = sshll.u32 (!%p172_p3), %s726_s19, 3  ;;  %s178_s30 = scalar_lea.sflag (!%p172_p3), [#allocation3], %s726_s19 }
  0x20   : > { %s181_s3 = scalar_lea.vmem (!%p172_p3), [#allocation2], %s729_s29 }
  0x21   : > { %599 = dma.done.wait (%p696_p8), %s178_s30, 128  }
  0x22   : > { %601 = vsyncadd (%p696_p8), %s178_s30, 4294967168  ;;  %s188_s25 = scalar_lea.sflag [#allocation6], %s726_s19  ;;  %s191_s26 = scalar_lea.vmem [#allocation5], %s729_s29 }
  0x23   : > { %603 = dma.done.wait (%p696_p8), %s188_s25, 128  }
  0x24   : > { %605 = vsyncadd (%p696_p8), %s188_s25, 4294967168  ;;  %v225_v0 = vld [vmem:[%s181_s3] sm:$0xff]  ;;  %v226_v11 = vld [vmem:[%s191_s26] sm:$0xff]  ;;  %s407_s21 = sshll.u32 %s624_s12, 3  ;;  %s217_s6 = scalar_lea.vmem [#allocation7], %s729_s29 }
  0x25   : > { %v227_v1 = vand.u32 2147483647, %v225_v0  ;;  %vm249_vm0 = vcmp.ge.f32.partialorder %v225_v0, 0.0  ;;  %v231_v24 = vmax.f32 %v225_v0, 0.0  ;;  %v232_v25 = vmul.f32 %v226_v11, %v225_v0  ;;  %s286_s5 = scalar_lea.hbm %s784_s2, %s407_s21  ;;  %s288_s7 = sshll.u32 %s217_s6, 4  ;;  %s289_s7 = int_to_ptr.vmem [resolvable:$true] %s288_s7 }
  0x26   : > { %vm267_vm4 = vcmp.gt.f32.partialorder %v226_v11, 0.0  ;;  %s290_s8 = sshll.u32 %s286_s5, 4  ;;  %s276_s15 = scalar_lea.sflag [#allocation4], %s726_s19  ;;  %s291_s8 = int_to_ptr.hbm [resolvable:$true] %s290_s8 }
  0x27   : > { %v228_v2 = vsub.f32 0.0, %v227_v1  ;;  %v233_v31 = vsub.f32 %v231_v24, %v232_v25  ;;  %s560_s12 = sshra.s32 %s291_s8, 4  ;;  %s566_s28 = scalar_lea.hbm %s784_s2, 16  ;;  %s561_s12 = int_to_ptr.hbm [resolvable:$true] %s560_s12 }
  0x28   : > { %s562_s16 = scalar_lea.hbm %s561_s12, 8  ;;  %p567_p7 = scmp.lt.s32.totalorder %s561_s12, %s784_s2 }
  0x29   : > { %v229_v3 = vmul.f32 1.442695, %v228_v2  ;;  %p563_p4 = scmp.ne.s32.totalorder %s561_s12, %s562_s16  ;;  %p568_p8 = scmp.lt.s32.totalorder %s566_s28, %s562_s16 }
  0x2b   : > { %478 = vpow2.f32 %v229_v3  ;;  %p564_p5 = pnand %p563_p4, %p700_p9  ;;  %p569_p10 = por %p568_p8, %p567_p7 }
  0x2d   : > { %p565_p6 = pneg %p564_p5 }
  0x2f   : > { %p570_p13 = pnand %p569_p10, %p565_p6 }
  0x31   : > { %v479_v4 = vpop.eup %478 }
  0x32   : > { %v234_v5 = vadd.f32 1.0, %v479_v4  ;;  %v250_v9 = vsel %vm249_vm0, 1.0, %v479_v4  ;;  %v237_v16 = vmul.f32 -0.5, %v479_v4  ;;  %v240_v22 = vand.u32 2147483647, %v479_v4 }
  0x34   : > { %480 = vrcp.f32 %v234_v5  ;;  %v238_v19 = vadd.f32 1.0, %v237_v16  ;;  %vm241_vm1 = vcmp.lt.f32.partialorder %v240_v22, 0.0004427343 }
  0x36   : > { %v239_v27 = vmul.f32 %v479_v4, %v238_v19 }
  0x3a   : > { %v481_v6 = vpop.eup %480 }
  0x3b   : > { %v246_v7 = vmul.f32 %v481_v6, %v234_v5 }
  0x3d   : > { %v247_v8 = vsub.f32 2.0, %v246_v7 }
  0x3f   : > { %v248_v10 = vmul.f32 %v481_v6, %v247_v8 }
  0x41   : > { %v251_v12 = vmul.f32 %v250_v9, %v248_v10 }
  0x43   : > { %v252_v13 = vsub.f32 %v251_v12, %v226_v11 }
  0x45   : > { %v253_v14 = vand.u32 2147483647, %v252_v13 }
  0x47   : > { %482 = vrsqrt.f32 %v253_v14  ;;  %vm261_vm2 = vcmp.eq.f32.partialorder %v253_v14, inf  ;;  %v264_v29 = vand.u32 2147483648, %v253_v14  ;;  %vm263_vm3 = vcmp.eq.f32.partialorder %v253_v14, 0.0 }
  0x48   : > { %484 = vlog2.f32 %v234_v5 }
  0x4d   : > { %v483_v15 = vpop.eup %482 }
  0x4e   : > { %v255_v17 = vmul.f32 %v483_v15, %v253_v14  ;;  %v485_v21 = vpop.eup %484 }
  0x4f   : > { %v236_v26 = vmul.f32 0.6931472, %v485_v21 }
  0x50   : > { %v256_v18 = vmul.f32 %v483_v15, %v255_v17 }
  0x51   : > { %v242_v32 = vsel %vm241_vm1, %v239_v27, %v236_v26 }
  0x52   : > { %v257_v20 = vmul.f32 0.5, %v256_v18  ;;  %v243_v36 = vadd.f32 %v242_v32, %v233_v31 }
  0x54   : > { %v258_v23 = vsub.f32 1.5, %v257_v20 }
  0x56   : > { %v259_v28 = vmul.f32 %v483_v15, %v258_v23 }
  0x58   : > { %v260_v30 = vmul.f32 %v259_v28, %v253_v14 }
  0x5a   : > { %v262_v33 = vsel %vm261_vm2, %v253_v14, %v260_v30 }
  0x5b   : > { %v265_v34 = vsel %vm263_vm3, %v264_v29, %v262_v33 }
  0x5c   : > { %v266_v35 = vmul.f32 %v265_v34, %v253_v14 }
  0x5e   : > { %v268_v37 = vmul.f32 0.25, %v266_v35 }
  0x60   : > { %v269_v38 = vsel %vm267_vm4, %v226_v11, %v268_v37 }
  0x61   : > { %v270_v39 = vmul.f32 %v269_v38, %v243_v36 }
  0x63   : > { %274 = vst [vmem:[%s217_s6] sm:$0xff] %v270_v39 }
  0x64   : > { %573 = shalt.err (!%p570_p13)
}
  0x65   : > { %414 = dma.vmem_to_hbm [thread:$0]  (%p700_p9), %s289_s7, 128, %s291_s8, %s276_s15  }
  0x66 PF: > { %s302_s19 = sand.u32 1, %s612_s9   ;;  %p424_p0 = pnand %p397_p12, %p707_p11 }
  0x67   : > { %s303_s3 = scalar_lea.sflag [#allocation4], %s302_s19 }
  0x68   : > { %p425_p1 = pneg %p424_p0 }
  0x6a   : > { %607 = dma.done.wait (%p425_p1), %s303_s3, 128  }
  0x6b   : > { %609 = vsyncadd (%p425_p1), %s303_s3, 4294967168  ;;  %s21_s14 = sadd.s32 1, %s632_s14   ;;  %s789_s9 = smov %s616_s10 }
  0x6c   : > { %p18_p2 = scmp.ge.s32.totalorder %s21_s14, 4   ;;  %s790_s10 = smov %s620_s11 }
  0x6d   : > { %s791_s11 = smov %s705_s23  ;;  %s792_s12 = smov %s628_s13 }
  0x6e   : > { %s793_s13 = smov %s795_s17  ;;  %20 = sbr.rel (!%p18_p2) target bundleno = 8 (0x8), region = 90 }
  0x73   :  { %309 = vsyncpa [#allocation3], 1 }
  0x74   :  { %311 = vsyncpa [#allocation3 + $0x1], 1 }
  0x75   :  { %312 = vsyncpa [#allocation6], 1 }
  0x76   :  { %314 = vsyncpa [#allocation6 + $0x1], 1 }
  0x77   :  { %315 = vsyncpa [#allocation4], 1 }
  0x78   :  { %317 = vsyncpa [#allocation4 + $0x1], 1 }

</bundles_post_ra>
